<compile_context>
chip_gen: v7x
topology: tpu7x:2x2x1
jax: 0.10.0
libtpu: 0.0.40
codegen_flags: <defaults>
</compile_context>

<pallas_src>
import functools

import jax
import jax.numpy as jnp
from jax import lax
from jax.experimental import pallas as pl
from jax.experimental.pallas import tpu as pltpu


def _cdiv(a, b):
    return -(-a // b)


def _round_up(a, b):
    return _cdiv(a, b) * b


def _num_tensorcores():
    """2 only on v7x (two TensorCores per chip); 1 elsewhere (safe default)."""
    try:
        kind = jax.devices()[0].device_kind.lower()
    except Exception:
        return 1
    if "v7" in kind or "7x" in kind:
        return 2
    return 1


def _vmem_limit_bytes():
    """Generation-aware scoped-VMEM limit."""
    try:
        kind = jax.devices()[0].device_kind.lower()
    except Exception:
        kind = ""
    if "v7" in kind or "7x" in kind:
        return 48 * 1024 * 1024                      # 64 MiB physical per TC
    cap = None
    try:
        info = pltpu.get_tpu_info()
        for name in ("vmem_capacity_bytes", "vmem_bytes", "vmem_size_bytes"):
            v = getattr(info, name, None)
            if v:
                cap = int(v)
                break
    except Exception:
        cap = None
    if not cap or cap <= 0:
        return 48 * 1024 * 1024                      # conservative fallback
    return int(min(3 * cap // 4, 96 * 1024 * 1024))  # v5e/v6e: 128 MiB physical


def _alignment_kernel(scale_ref,      # SMEM scalar prefetch: (1,) exp(temperature)
                      obj_ref,        # (Bt, N, D)
                      lab_ref,        # (Bt, 1, N) f32, lane-dense labels
                      pos_ref,        # (Bt, 1, D)
                      neg_ref,        # (Bt, M, D)
                      pos_sum_ref,    # (1, 1) per-core accumulator (pos BCE sum)
                      neg_sum_ref,    # (1, 1) per-core accumulator (neg BCE sum)
                      *, steps, block_b, batch, needs_mask):
    g = pl.program_id(0)
    s = pl.program_id(1)

    @pl.when(s == 0)
    def _init():
        pos_sum_ref[...] = jnp.zeros_like(pos_sum_ref)
        neg_sum_ref[...] = jnp.zeros_like(neg_sum_ref)

    scale = scale_ref[0]                      # exp(temperature), hoisted to wrapper

    obj = obj_ref[...]                        # (Bt, N, D)
    pos = pos_ref[...]                        # (Bt, 1, D)
    neg = neg_ref[...]                        # (Bt, M, D)
    lab = lab_ref[...]                        # (Bt, 1, N)

    # Lane-dense (transposed) logits: the big dim N sits on the 128-lane axis;
    # contraction is on the last dim of both operands (MXU-native, f32 acc).
    xp = jnp.einsum('bpd,bnd->bpn', pos, obj,
                    preferred_element_type=jnp.float32) * scale     # (Bt, 1, N)
    xn = jnp.einsum('bmd,bnd->bmn', neg, obj,
                    preferred_element_type=jnp.float32) * scale     # (Bt, M, N)

    # Stable BCE-with-logits pieces: max(x,0) - x*y + log1p(exp(-|x|)).
    sp_p = jnp.maximum(xp, 0.0) + jnp.log1p(jnp.exp(-jnp.abs(xp)))  # (Bt, 1, N)
    sp_n = jnp.maximum(xn, 0.0) + jnp.log1p(jnp.exp(-jnp.abs(xn)))  # (Bt, M, N)

    # sum_m(neg_logits * neg_labels) == (1 - label) * rowmax(neg_logits) exactly,
    # so the argmax one-hot is never built (one sublane reduce instead of two).
    neg_max = jnp.max(xn, axis=1, keepdims=True)                    # (Bt, 1, N)
    sp_n_sum = jnp.sum(sp_n, axis=1, keepdims=True)                 # (Bt, 1, N)

    row_pos = sp_p - xp * lab                                       # (Bt, 1, N)
    row_neg = sp_n_sum - (1.0 - lab) * neg_max                      # (Bt, 1, N)

    if needs_mask:
        # Batch remainder / duplicate megacore blocks: zero the contribution of
        # rows whose *logical* batch index is >= batch.  jnp.where selects, so
        # NaN/Inf from garbage out-of-bounds reads cannot leak into the sums.
        start = (g * steps + s) * block_b
        bidx = lax.broadcasted_iota(jnp.int32, row_pos.shape, 0)
        valid = (start + bidx) < batch
        row_pos = jnp.where(valid, row_pos, 0.0)
        row_neg = jnp.where(valid, row_neg, 0.0)

    # TODO(synk): for extremely large B*N*M, per-step partial sums (instead of a
    # single running f32 scalar) would match jnp.mean's pairwise reduction better.
    pos_sum_ref[...] += jnp.sum(jnp.sum(row_pos, axis=2, keepdims=True), axis=0)
    neg_sum_ref[...] += jnp.sum(jnp.sum(row_neg, axis=2, keepdims=True), axis=0)


def alignment_loss(object_tokens, labels, pos_tokens, neg_tokens,
                   temperature, positive_weight=1.0):
    """Pallas implementation of AlignmentLoss.forward.

    object_tokens: (B, N, D)  f32 or bf16 (bf16 recommended: halves HBM traffic)
    labels:        (B, N)     0/1
    pos_tokens:    (B, 1, D)  same dtype as object_tokens (n_pos must be 1)
    neg_tokens:    (B, M, D)  same dtype as object_tokens
    temperature:   scalar parameter
    """
    B, N, D = object_tokens.shape
    n_pos = pos_tokens.shape[1]
    assert n_pos == 1, "n_pos must be 1"
    M = neg_tokens.shape[1]
    assert M >= 1, "need at least one negative token"
    K = M + 1

    # Lane-dense labels (N on the lane axis) and exp(temperature) hoisted out.
    labels3 = labels.astype(jnp.float32).reshape(B, 1, N)
    scale = jnp.exp(jnp.asarray(temperature, dtype=jnp.float32)).reshape(1)

    # --- tiling: G "parallel" cores x S sequential steps, Bt batches / step ---
    G = max(1, min(_num_tensorcores(), B))
    vmem_limit = _vmem_limit_bytes()

    in_bytes = object_tokens.dtype.itemsize
    Dp = _round_up(D, 128)
    Np = _round_up(N, 128)
    N16 = _round_up(N, 16)
    M16 = _round_up(M, 16)
    # Per-batch VMEM, with lane/sublane layout padding (conservative):
    #   inputs  : obj + neg + pos (token dtype) + labels (f32)
    #   temps   : xn/sp_n-sized f32 tensors + a handful of (1, N) f32 rows.
    per_b_in = in_bytes * (N16 * Dp + M16 * Dp + 16 * Dp) + 4 * 16 * Np
    per_b_tmp = 4 * (4 * M16 * Np + 8 * 16 * Np)
    budget = int(0.6 * vmem_limit)
    bt_budget = max(1, budget // (2 * per_b_in + per_b_tmp))   # inputs double-buffered
    Bt = int(max(1, min(_cdiv(B, G), bt_budget)))

    num_blocks = _cdiv(B, Bt)
    S = int(_cdiv(num_blocks, G))
    needs_mask = (G * S * Bt) != B
    last_block = num_blocks - 1

    def in_map(g, s, scale_ref):
        # Clamp so duplicate (megacore-slack) blocks never DMA fully out of
        # bounds; their contribution is zeroed by the in-kernel validity mask.
        return (jnp.minimum(g * S + s, last_block), 0, 0)

    def out_map(g, s, scale_ref):
        return (g, 0)

    kernel = functools.partial(_alignment_kernel, steps=S, block_b=Bt,
                               batch=B, needs_mask=needs_mask)

    flops = 2 * B * N * K * D
    transcendentals = 2 * B * N * K
    bytes_accessed = ((object_tokens.size + pos_tokens.size + neg_tokens.size)
                      * in_bytes + labels3.size * 4 + 2 * G * 4)

    pos_sums, neg_sums = pl.pallas_call(
        kernel,
        out_shape=(jax.ShapeDtypeStruct((G, 1), jnp.float32),
                   jax.ShapeDtypeStruct((G, 1), jnp.float32)),
        grid_spec=pltpu.PrefetchScalarGridSpec(
            num_scalar_prefetch=1,
            grid=(G, S),
            in_specs=[
                pl.BlockSpec((Bt, N, D), in_map),     # object_tokens
                pl.BlockSpec((Bt, 1, N), in_map),     # labels (lane-dense)
                pl.BlockSpec((Bt, 1, D), in_map),     # pos_tokens
                pl.BlockSpec((Bt, M, D), in_map),     # neg_tokens
            ],
            out_specs=[
                pl.BlockSpec((1, 1), out_map),        # pos BCE sum per core
                pl.BlockSpec((1, 1), out_map),        # neg BCE sum per core
            ],
        ),
        compiler_params=pltpu.CompilerParams(
            dimension_semantics=("parallel", "arbitrary"),
            vmem_limit_bytes=vmem_limit,
        ),
        cost_estimate=pl.CostEstimate(flops=flops,
                                      transcendentals=transcendentals,
                                      bytes_accessed=bytes_accessed),
    )(scale, object_tokens, labels3, pos_tokens, neg_tokens)

    # reduction='mean' denominators (plain JAX glue).
    pos_loss = jnp.sum(pos_sums) / (B * N * n_pos)
    neg_loss = jnp.sum(neg_sums) / (B * N * M)
    return positive_weight * pos_loss + neg_loss


def _reference_loss(object_tokens, labels, pos_tokens, neg_tokens,
                    temperature, positive_weight=1.0):
    scale = jnp.exp(temperature)
    pos_logits = jnp.einsum('bnd,bmd->bnm', object_tokens, pos_tokens) * scale
    neg_logits = jnp.einsum('bnd,bmd->bnm', object_tokens, neg_tokens) * scale
    pos_labels = labels[..., None]
    neg_base = (1.0 - labels)[..., None]
    idx = jnp.argmax(neg_logits, axis=-1)
    mask = jax.nn.one_hot(idx, neg_tokens.shape[1], dtype=jnp.float32)
    neg_labels = neg_base * mask

    def bce(x, y):
        return jnp.mean(jnp.maximum(x, 0.0) - x * y
                        + jnp.log1p(jnp.exp(-jnp.abs(x))))

    return positive_weight * bce(pos_logits, pos_labels) + bce(neg_logits, neg_labels)


if __name__ == "__main__":
    key = jax.random.PRNGKey(0)
    k1, k2, k3, k4 = jax.random.split(key, 4)

    B, N, M, D = 2, 8, 8, 32        # batch, object tokens, neg tokens, hidden
    positive_weight = 1.0
    temperature = 0.07              # deterministic parameter init (as in __init__)

    object_tokens = jax.random.normal(k1, (B, N, D), dtype=jnp.float32)
    pos_tokens = jax.random.normal(k2, (B, 1, D), dtype=jnp.float32)
    neg_tokens = jax.random.normal(k3, (B, M, D), dtype=jnp.float32)
    labels = jax.random.bernoulli(k4, 0.5, (B, N)).astype(jnp.float32)

    # bf16 token streams (halves kernel HBM traffic); matmuls accumulate in f32.
    obj_bf = object_tokens.astype(jnp.bfloat16)
    pos_bf = pos_tokens.astype(jnp.bfloat16)
    neg_bf = neg_tokens.astype(jnp.bfloat16)

    loss = alignment_loss(obj_bf, labels, pos_bf, neg_bf,
                          temperature, positive_weight)
    loss = jax.block_until_ready(loss)

    # Reference computed on the same (bf16-rounded) values upcast to f32.
    ref = _reference_loss(obj_bf.astype(jnp.float32), labels,
                          pos_bf.astype(jnp.float32), neg_bf.astype(jnp.float32),
                          jnp.float32(temperature), positive_weight)
    assert jnp.allclose(loss, ref, rtol=1e-5, atol=1e-5), (loss, ref)

    print("KERNEL_OK")
</pallas_src>

<mosaic_0001>
module attributes {stable_mosaic.version = 11 : i64} {
  func.func @_alignment_kernel(%arg0: i32, %arg1: i32, %arg2: memref<1xf32, #tpu.memory_space<smem>>, %arg3: memref<2x8x32xbf16, #tpu.memory_space<vmem>>, %arg4: memref<2x1x8xf32, #tpu.memory_space<vmem>>, %arg5: memref<2x1x32xbf16, #tpu.memory_space<vmem>>, %arg6: memref<2x8x32xbf16, #tpu.memory_space<vmem>>, %arg7: memref<1x1xf32, #tpu.memory_space<vmem>>, %arg8: memref<1x1xf32, #tpu.memory_space<vmem>>) attributes {dimension_semantics = [#tpu.dimension_semantics<parallel>, #tpu.dimension_semantics<arbitrary>], iteration_bounds = array<i64: 1, 1>, scalar_prefetch = 1 : i64, scratch_operands = 0 : i64, tpu.core_type = #tpu.core_type<tc>, window_params = [{transform_indices = @transform_0, window_bounds = array<i64: 2, 8, 32>}, {transform_indices = @transform_1, window_bounds = array<i64: 2, 1, 8>}, {transform_indices = @transform_2, window_bounds = array<i64: 2, 1, 32>}, {transform_indices = @transform_3, window_bounds = array<i64: 2, 8, 32>}, {transform_indices = @transform_4, window_bounds = array<i64: 1, 1>}, {transform_indices = @transform_5, window_bounds = array<i64: 1, 1>}]} {
    %c0_i32 = arith.constant 0 : i32
    %0 = arith.cmpi eq, %arg1, %c0_i32 : i32
    %1 = arith.extui %0 : i1 to i32
    %c0_i32_0 = arith.constant 0 : i32
    %2 = arith.cmpi ne, %1, %c0_i32_0 : i32
    scf.if %2 {
      %cst_33 = arith.constant 0.000000e+00 : f32
      %52 = vector.broadcast %cst_33 : f32 to vector<1x1xf32>
      %c0_34 = arith.constant 0 : index
      %c0_35 = arith.constant 0 : index
      %53 = vector.load %arg7[%c0_34, %c0_35] : memref<1x1xf32, #tpu.memory_space<vmem>>, vector<1x1xf32>
      tpu.vector_store %arg7[%c0_34, %c0_35], %52 {strides = array<i32>} : memref<1x1xf32, #tpu.memory_space<vmem>>, vector<1x1xf32>,
      %cst_36 = arith.constant 0.000000e+00 : f32
      %54 = vector.broadcast %cst_36 : f32 to vector<1x1xf32>
      %c0_37 = arith.constant 0 : index
      %c0_38 = arith.constant 0 : index
      %55 = vector.load %arg8[%c0_37, %c0_38] : memref<1x1xf32, #tpu.memory_space<vmem>>, vector<1x1xf32>
      tpu.vector_store %arg8[%c0_37, %c0_38], %54 {strides = array<i32>} : memref<1x1xf32, #tpu.memory_space<vmem>>, vector<1x1xf32>,
    } else {
    }
    %c0 = arith.constant 0 : index
    %3 = memref.load %arg2[%c0] : memref<1xf32, #tpu.memory_space<smem>>
    %c0_1 = arith.constant 0 : index
    %c0_2 = arith.constant 0 : index
    %c0_3 = arith.constant 0 : index
    %4 = vector.load %arg3[%c0_1, %c0_2, %c0_3] : memref<2x8x32xbf16, #tpu.memory_space<vmem>>, vector<2x8x32xbf16>
    %c0_4 = arith.constant 0 : index
    %c0_5 = arith.constant 0 : index
    %c0_6 = arith.constant 0 : index
    %5 = vector.load %arg5[%c0_4, %c0_5, %c0_6] : memref<2x1x32xbf16, #tpu.memory_space<vmem>>, vector<2x1x32xbf16>
    %c0_7 = arith.constant 0 : index
    %c0_8 = arith.constant 0 : index
    %c0_9 = arith.constant 0 : index
    %6 = vector.load %arg6[%c0_7, %c0_8, %c0_9] : memref<2x8x32xbf16, #tpu.memory_space<vmem>>, vector<2x8x32xbf16>
    %c0_10 = arith.constant 0 : index
    %c0_11 = arith.constant 0 : index
    %c0_12 = arith.constant 0 : index
    %7 = vector.load %arg4[%c0_10, %c0_11, %c0_12] : memref<2x1x8xf32, #tpu.memory_space<vmem>>, vector<2x1x8xf32>
    "tpu.trace_start"() <{level = 10 : i32, message = "bpd,bnd->bpn"}> : () -> ()
    %cst = arith.constant dense<0.000000e+00> : vector<2x1x8xf32>
    %8 = tpu.matmul %5, %4, %cst {dimension_numbers = #tpu.dot_dimension_numbers<[2], [2], [1], [1], [0, 0, 0, 1, 1, 1], [0], [0]>} : vector<2x1x32xbf16>, vector<2x8x32xbf16>, vector<2x1x8xf32> -> vector<2x1x8xf32>
    "tpu.trace_stop"() : () -> ()
    %9 = vector.broadcast %3 : f32 to vector<2x1x8xf32>
    %10 = arith.mulf %8, %9 : vector<2x1x8xf32>
    "tpu.trace_start"() <{level = 10 : i32, message = "bmd,bnd->bmn"}> : () -> ()
    %cst_13 = arith.constant dense<0.000000e+00> : vector<2x8x8xf32>
    %11 = tpu.matmul %6, %4, %cst_13 {dimension_numbers = #tpu.dot_dimension_numbers<[2], [2], [1], [1], [0, 0, 0, 1, 1, 1], [0], [0]>} : vector<2x8x32xbf16>, vector<2x8x32xbf16>, vector<2x8x8xf32> -> vector<2x8x8xf32>
    "tpu.trace_stop"() : () -> ()
    %12 = vector.broadcast %3 : f32 to vector<2x8x8xf32>
    %13 = arith.mulf %11, %12 : vector<2x8x8xf32>
    %cst_14 = arith.constant 0.000000e+00 : f32
    %14 = vector.broadcast %cst_14 : f32 to vector<2x1x8xf32>
    %15 = arith.maximumf %10, %14 : vector<2x1x8xf32>
    %16 = math.absf %10 : vector<2x1x8xf32>
    %cst_15 = arith.constant 0.000000e+00 : f32
    %17 = vector.broadcast %cst_15 : f32 to vector<2x1x8xf32>
    %18 = arith.subf %17, %16 : vector<2x1x8xf32>
    %19 = math.exp %18 : vector<2x1x8xf32>
    %20 = math.log1p %19 : vector<2x1x8xf32>
    %21 = arith.addf %15, %20 : vector<2x1x8xf32>
    %cst_16 = arith.constant 0.000000e+00 : f32
    %22 = vector.broadcast %cst_16 : f32 to vector<2x8x8xf32>
    %23 = arith.maximumf %13, %22 : vector<2x8x8xf32>
    %24 = math.absf %13 : vector<2x8x8xf32>
    %cst_17 = arith.constant 0.000000e+00 : f32
    %25 = vector.broadcast %cst_17 : f32 to vector<2x8x8xf32>
    %26 = arith.subf %25, %24 : vector<2x8x8xf32>
    %27 = math.exp %26 : vector<2x8x8xf32>
    %28 = math.log1p %27 : vector<2x8x8xf32>
    %29 = arith.addf %23, %28 : vector<2x8x8xf32>
    %cst_18 = arith.constant dense<0xFF800000> : vector<2x8xf32>
    %30 = vector.multi_reduction <maximumf>, %13, %cst_18 [1] : vector<2x8x8xf32> to vector<2x8xf32>
    %31 = vector.shape_cast %30 : vector<2x8xf32> to vector<2x1x8xf32>
    %cst_19 = arith.constant dense<0.000000e+00> : vector<2x8xf32>
    %32 = vector.multi_reduction <add>, %29, %cst_19 [1] : vector<2x8x8xf32> to vector<2x8xf32>
    %33 = vector.shape_cast %32 : vector<2x8xf32> to vector<2x1x8xf32>
    %34 = arith.mulf %10, %7 : vector<2x1x8xf32>
    %35 = arith.subf %21, %34 : vector<2x1x8xf32>
    %cst_20 = arith.constant 1.000000e+00 : f32
    %36 = vector.broadcast %cst_20 : f32 to vector<2x1x8xf32>
    %37 = arith.subf %36, %7 : vector<2x1x8xf32>
    %38 = arith.mulf %37, %31 : vector<2x1x8xf32>
    %39 = arith.subf %33, %38 : vector<2x1x8xf32>
    %c0_21 = arith.constant 0 : index
    %c0_22 = arith.constant 0 : index
    %40 = vector.load %arg7[%c0_21, %c0_22] : memref<1x1xf32, #tpu.memory_space<vmem>>, vector<1x1xf32>
    %cst_23 = arith.constant dense<0.000000e+00> : vector<2x1xf32>
    %41 = vector.multi_reduction <add>, %35, %cst_23 [2] : vector<2x1x8xf32> to vector<2x1xf32>
    %42 = vector.shape_cast %41 : vector<2x1xf32> to vector<2x1x1xf32>
    %cst_24 = arith.constant dense<0.000000e+00> : vector<1x1xf32>
    %43 = vector.multi_reduction <add>, %42, %cst_24 [0] : vector<2x1x1xf32> to vector<1x1xf32>
    %44 = arith.addf %40, %43 : vector<1x1xf32>
    %c0_25 = arith.constant 0 : index
    %c0_26 = arith.constant 0 : index
    %45 = vector.load %arg7[%c0_25, %c0_26] : memref<1x1xf32, #tpu.memory_space<vmem>>, vector<1x1xf32>
    tpu.vector_store %arg7[%c0_25, %c0_26], %44 {strides = array<i32>} : memref<1x1xf32, #tpu.memory_space<vmem>>, vector<1x1xf32>,
    %c0_27 = arith.constant 0 : index
    %c0_28 = arith.constant 0 : index
    %46 = vector.load %arg8[%c0_27, %c0_28] : memref<1x1xf32, #tpu.memory_space<vmem>>, vector<1x1xf32>
    %cst_29 = arith.constant dense<0.000000e+00> : vector<2x1xf32>
    %47 = vector.multi_reduction <add>, %39, %cst_29 [2] : vector<2x1x8xf32> to vector<2x1xf32>
    %48 = vector.shape_cast %47 : vector<2x1xf32> to vector<2x1x1xf32>
    %cst_30 = arith.constant dense<0.000000e+00> : vector<1x1xf32>
    %49 = vector.multi_reduction <add>, %48, %cst_30 [0] : vector<2x1x1xf32> to vector<1x1xf32>
    %50 = arith.addf %46, %49 : vector<1x1xf32>
    %c0_31 = arith.constant 0 : index
    %c0_32 = arith.constant 0 : index
    %51 = vector.load %arg8[%c0_31, %c0_32] : memref<1x1xf32, #tpu.memory_space<vmem>>, vector<1x1xf32>
    tpu.vector_store %arg8[%c0_31, %c0_32], %50 {strides = array<i32>} : memref<1x1xf32, #tpu.memory_space<vmem>>, vector<1x1xf32>,
    return
  }
  func.func @transform_0(%arg0: i32, %arg1: i32, %arg2: memref<1xf32, #tpu.memory_space<smem>>) -> (i32, i32, i32) {
    %c1_i32 = arith.constant 1 : i32
    %0 = arith.muli %arg0, %c1_i32 : i32
    %1 = arith.addi %0, %arg1 : i32
    %c0_i32 = arith.constant 0 : i32
    %2 = arith.minsi %1, %c0_i32 : i32
    %c0_i32_0 = arith.constant 0 : i32
    %c0_i32_1 = arith.constant 0 : i32
    %c0_i32_2 = arith.constant 0 : i32
    return %2, %c0_i32_0, %c0_i32_1 : i32, i32, i32
  }
  func.func @transform_1(%arg0: i32, %arg1: i32, %arg2: memref<1xf32, #tpu.memory_space<smem>>) -> (i32, i32, i32) {
    %c1_i32 = arith.constant 1 : i32
    %0 = arith.muli %arg0, %c1_i32 : i32
    %1 = arith.addi %0, %arg1 : i32
    %c0_i32 = arith.constant 0 : i32
    %2 = arith.minsi %1, %c0_i32 : i32
    %c0_i32_0 = arith.constant 0 : i32
    %c0_i32_1 = arith.constant 0 : i32
    %c0_i32_2 = arith.constant 0 : i32
    return %2, %c0_i32_0, %c0_i32_1 : i32, i32, i32
  }
  func.func @transform_2(%arg0: i32, %arg1: i32, %arg2: memref<1xf32, #tpu.memory_space<smem>>) -> (i32, i32, i32) {
    %c1_i32 = arith.constant 1 : i32
    %0 = arith.muli %arg0, %c1_i32 : i32
    %1 = arith.addi %0, %arg1 : i32
    %c0_i32 = arith.constant 0 : i32
    %2 = arith.minsi %1, %c0_i32 : i32
    %c0_i32_0 = arith.constant 0 : i32
    %c0_i32_1 = arith.constant 0 : i32
    %c0_i32_2 = arith.constant 0 : i32
    return %2, %c0_i32_0, %c0_i32_1 : i32, i32, i32
  }
  func.func @transform_3(%arg0: i32, %arg1: i32, %arg2: memref<1xf32, #tpu.memory_space<smem>>) -> (i32, i32, i32) {
    %c1_i32 = arith.constant 1 : i32
    %0 = arith.muli %arg0, %c1_i32 : i32
    %1 = arith.addi %0, %arg1 : i32
    %c0_i32 = arith.constant 0 : i32
    %2 = arith.minsi %1, %c0_i32 : i32
    %c0_i32_0 = arith.constant 0 : i32
    %c0_i32_1 = arith.constant 0 : i32
    %c0_i32_2 = arith.constant 0 : i32
    return %2, %c0_i32_0, %c0_i32_1 : i32, i32, i32
  }
  func.func @transform_4(%arg0: i32, %arg1: i32, %arg2: memref<1xf32, #tpu.memory_space<smem>>) -> (i32, i32) {
    %c0_i32 = arith.constant 0 : i32
    %c0_i32_0 = arith.constant 0 : i32
    return %arg0, %c0_i32 : i32, i32
  }
  func.func @transform_5(%arg0: i32, %arg1: i32, %arg2: memref<1xf32, #tpu.memory_space<smem>>) -> (i32, i32) {
    %c0_i32 = arith.constant 0 : i32
    %c0_i32_0 = arith.constant 0 : i32
    return %arg0, %c0_i32 : i32, i32
  }
}

</mosaic_0001>

<bundles_post_ra>
// kernel: tpu_custom_call.1
= control target key start
LH: loop header
LB: loop body
LE: loop exit
PB: predicated region body
PF: predicated region fallthrough
CT: control target
= control target key end

     0   :  { %13 = vsyncpa [#allocation5], 0  ;;  %s801_s0 = inlined_call_operand.<no memory space> [shape: f32[1], index: 0, kind: input, shape index: {}]   ;;  %s802_s1 = inlined_call_operand.hbm [shape: bf16[2,8,32], index: 1, kind: input, shape index: {}]   ;;  %s803_s2 = inlined_call_operand.vmem [shape: f32[2,1,8], index: 2, kind: input, shape index: {}]   ;;  %s804_s3 = inlined_call_operand.vmem [shape: bf16[2,1,32], index: 3, kind: input, shape index: {}]   ;;  %s805_s4 = inlined_call_operand.vmem [shape: bf16[2,8,32], index: 4, kind: input, shape index: {}]   ;;  %s806_s5 = inlined_call_operand.hbm [shape: f32[1,1], index: 5, kind: output, shape index: {0}]   ;;  %s807_s6 = inlined_call_operand.hbm [shape: f32[1,1], index: 6, kind: output, shape index: {1}]  }
   0x1   :  { %14 = vsyncpa [#allocation6], 0 }
   0x2   :  { %15 = vsyncpa [#allocation9], 0  ;;  %s638_s21 = smov [#allocation4]   ;;  %s566_s25 = scalar_lea.hbm %s802_s1, 128 }
   0x3   :  { %s27_s22 = sshll.u32 %s638_s21, 4  ;;  %p567_p0 = scmp.ne.s32.totalorder %s802_s1, %s566_s25  ;;  %s28_s22 = int_to_ptr.vmem [resolvable:$true] %s27_s22 }
   0x4   :  { %p570_p1 = scmp.lt.u32.totalorder %s566_s25, %s802_s1 }
   0x6   :  { %p572_p2 = pnand %p570_p1, %p567_p0 }
   0x8   :  { %575 = shalt.err (!%p572_p2)
}
   0x9   :  { %s576_s30 = scalar_lea.vmem %s28_s22, 128  ;;  %p581_p4 = scmp.lt.s32.totalorder %s28_s22, %s28_s22 }
   0xa   :  { %p577_p3 = scmp.ne.s32.totalorder %s28_s22, %s576_s30  ;;  %p582_p5 = scmp.lt.s32.totalorder %s576_s30, %s576_s30 }
   0xc   :  { %p583_p6 = por %p582_p5, %p581_p4 }
   0xe   :  { %p584_p7 = pnand %p583_p6, %p577_p3 }
  0x10   :  { %587 = shalt.err (!%p584_p7)
}
  0x11   :  { %s639_s7 = smov 64   ;;  %s640_s8 = smov 4  }
  0x12   :  { %33 = dma.hbm_to_vmem [thread:$0]  %s802_s1, 128, %s28_s22, [#allocation5], %s639_s7, %s639_s7, %s640_s8  }
  0x13   :  { %632 = dma.done.wait [#allocation5], 128  }
  0x14   :  { %633 = vsyncadd [#allocation5], 4294967168  ;;  %v641_v0 = vmov 0.0   ;;  %vm642_vm0 = vmmov 0   ;;  %vm154_vm1 = vcmask 261120   ;;  %v247_v9 = vstv %s801_s0 }
  0x15   :  { %519 = vmatprep.subr.bf16.mxu0 %v641_v0  ;;  %525 = vmatprep.subr.bf16.mxu1 %v641_v0  ;;  %v146_v1 = vld [vmem:[#allocation4] sm:$0xf]  ;;  %v147_v2 = vld [vmem:[#allocation4 + $0x4] sm:$0xf]  ;;  %vm398_vm2 = vcmask 64512   ;;  %vm438_vm5 = vcmask 57344  }
  0x16   :  { %521 = vmatprep.mubr.msk.bf16.mxu0 %vm642_vm0, %v641_v0  ;;  %527 = vmatprep.mubr.msk.bf16.mxu1 %vm642_vm0, %v641_v0  ;;  %v159_v3 = vsel %vm154_vm1, %v146_v1, 0  ;;  %v205_v4 = vsel %vm154_vm1, %v147_v2, 0  ;;  %v148_v5 = vld [vmem:[%s804_s3] sm:$0x1]  ;;  %v149_v6 = vld [vmem:[%s804_s3 + $0x1] sm:$0x1] }
  0x17   :  { %520 = vmatpush3.bf16.xpose.msra.mxu0 %v159_v3  ;;  %526 = vmatpush3.bf16.xpose.msra.mxu1 %v205_v4  ;;  %v150_v7 = vld [vmem:[%s805_s4] sm:$0xf]  ;;  %v151_v8 = vld [vmem:[%s805_s4 + $0x4] sm:$0xf]  ;;  %vm142_vm8 = vcmask 0   ;;  %vm445_vm9 = vcmask 1040384  }
  0x18   :  { %531 = vmatprep.subr.bf16.mxu0 %v641_v0  ;;  %537 = vmatprep.subr.bf16.mxu1 %v641_v0  ;;  %v745_v63 = vld [vmem:[%s803_s2] sm:$0x1]  ;;  %143 = vst.msk [vmem:[#allocation7] sm:$0x1] %vm142_vm8, %v641_v0  ;;  %144 = vst.msk [vmem:[#allocation8] sm:$0x1] %vm142_vm8, %v641_v0 }
  0x1e   :  { %522 = vmatmul.mubr.msk.bf16.vlgmr.msra.gmra.mrb[0].mxu0 %vm154_vm1, %v148_v5  ;;  %528 = vmatmul.mubr.msk.bf16.vlgmr.msra.gmra.mrb[0].mxu1 %vm154_vm1, %v149_v6 }
  0x1f   :  { %532 = vmatpush3.bf16.xpose.msra.mxu0 %v159_v3  ;;  %538 = vmatpush3.bf16.xpose.msra.mxu1 %v205_v4 }
  0x20   :  { %533 = vmatprep.mubr.msk.bf16.mxu0 %vm642_vm0, %v641_v0  ;;  %539 = vmatprep.mubr.msk.bf16.mxu1 %vm642_vm0, %v641_v0 }
  0x26   :  { %534 = vmatmul.mubr.msk.bf16.vlgmr.msra.gmra.mrb[4].mxu0 %vm154_vm1, %v150_v7  ;;  %540 = vmatmul.mubr.msk.bf16.vlgmr.msra.gmra.mrb[4].mxu1 %vm154_vm1, %v151_v8 }
  0xf1   :  { %v195_v10 = vpop.f32.mrb[0].mxu0  ;;  %v241_v11 = vpop.f32.mrb[0].mxu1 }
  0xf2   :  { %v725_v12 = vmul.f32 %v247_v9, %v195_v10  ;;  %v727_v13 = vmul.f32 %v247_v9, %v241_v11  ;;  %v523_v14 = vpop.f32.mrb[1].mxu0  ;;  %v529_v15 = vpop.f32.mrb[1].mxu1 }
  0xf3   :  { %v198_v16 = vpop.f32.mrb[2].mxu0  ;;  %v244_v17 = vpop.f32.mrb[2].mxu1 }
  0xf4   :  { %v340_v18 = vand.u32 2147483647, %v725_v12  ;;  %v341_v19 = vand.u32 2147483647, %v727_v13  ;;  %v524_v20 = vpop.f32.mrb[3].mxu0  ;;  %v530_v21 = vpop.f32.mrb[3].mxu1  ;;  %v427_v11 = vmul.f32 %v725_v12, %v745_v63 }
  0xf5   :  { %v338_v58 = vmax.f32 %v725_v12, 0.0  ;;  %v339_v6 = vmax.f32 %v727_v13, 0.0 }
  0xf6   :  { %v342_v22 = vsub.f32 0.0, %v340_v18  ;;  %v343_v23 = vsub.f32 0.0, %v341_v19 }
  0xf8   :  { %v344_v24 = vmul.f32 1.442695, %v342_v22  ;;  %v346_v25 = vmul.f32 1.442695, %v343_v23 }
  0xf9   :  { %v287_v26 = vpop.f32.mrb[4].mxu0  ;;  %v330_v27 = vpop.f32.mrb[4].mxu1 }
  0xfa   :  { %550 = vpow2.f32 %v344_v24  ;;  %v731_v28 = vmul.f32 %v287_v26, %v247_v9  ;;  %v733_v29 = vmul.f32 %v330_v27, %v247_v9  ;;  %v535_v30 = vpop.f32.mrb[5].mxu0  ;;  %v541_v31 = vpop.f32.mrb[5].mxu1  ;;  %v751_v9 = vld [vmem:[%s803_s2 + $0x1] sm:$0x1]  ;;  %s643_s2 = smov [#allocation7]  }
  0xfb   :  { %552 = vpow2.f32 %v346_v25  ;;  %v290_v32 = vpop.f32.mrb[6].mxu0  ;;  %v333_v33 = vpop.f32.mrb[6].mxu1  ;;  %v428_v21 = vmul.f32 %v727_v13, %v751_v9  ;;  %s470_s21 = sshll.u32 %s643_s2, 4  ;;  %s471_s21 = int_to_ptr.vmem [resolvable:$true] %s470_s21 }
  0xfc   :  { %v370_v34 = vand.u32 2147483647, %v731_v28  ;;  %v536_v35 = vpop.f32.mrb[7].mxu0  ;;  %v371_v36 = vand.u32 2147483647, %v733_v29  ;;  %v542_v37 = vpop.f32.mrb[7].mxu1  ;;  %p593_p9 = scmp.lt.s32.totalorder %s471_s21, %s471_s21 }
  0xfd   :  { %v399_v53 = vsel %vm398_vm2, %v731_v28, -inf  ;;  %v406_v59 = vsel %vm398_vm2, %v733_v29, -inf  ;;  %v368_v32 = vmax.f32 %v731_v28, 0.0  ;;  %s588_s22 = scalar_lea.vmem %s471_s21, 16  ;;  %s592_s23 = scalar_lea.vmem %s471_s21, 32 }
  0xfe   :  { %v372_v38 = vsub.f32 0.0, %v370_v34  ;;  %v373_v39 = vsub.f32 0.0, %v371_v36  ;;  %v400_v62 = vrot.slane %v399_v53, 4  ;;  %v407_v7 = vrot.slane %v406_v59, 4  ;;  %p589_p8 = scmp.ne.s32.totalorder %s471_s21, %s588_s22  ;;  %p594_p10 = scmp.lt.s32.totalorder %s592_s23, %s588_s22 }
  0xff   :  { %v369_v36 = vmax.f32 %v733_v29, 0.0 }
 0x100   :  { %v374_v40 = vmul.f32 1.442695, %v372_v38  ;;  %v376_v41 = vmul.f32 1.442695, %v373_v39  ;;  %v401_v16 = vmax.f32 %v399_v53, %v400_v62  ;;  %v408_v23 = vmax.f32 %v406_v59, %v407_v7  ;;  %v437_v7 = vld [vmem:[#allocation7] sm:$0x1]  ;;  %p595_p11 = por %p594_p10, %p593_p9 }
 0x101   :  { %v431_v53 = vsub.f32 1.0, %v745_v63 }
 0x102   :  { %554 = vpow2.f32 %v374_v40  ;;  %v402_v31 = vrot.slane %v401_v16, 2  ;;  %v409_v13 = vrot.slane %v408_v23, 2  ;;  %p596_p12 = pnand %p595_p11, %p589_p8 }
 0x103   :  { %556 = vpow2.f32 %v376_v41 }
 0x104   :  { %v551_v42 = vpop.eup %550  ;;  %v403_v41 = vmax.f32 %v401_v16, %v402_v31 }
 0x105   :  { %v553_v43 = vpop.eup %552  ;;  %v348_v44 = vadd.f32 1.0, %v551_v42  ;;  %v351_v46 = vmul.f32 -0.5, %v551_v42  ;;  %v354_v54 = vand.u32 2147483647, %v551_v42 }
 0x106   :  { %v357_v45 = vadd.f32 1.0, %v553_v43  ;;  %v360_v47 = vmul.f32 -0.5, %v553_v43  ;;  %v363_v56 = vand.u32 2147483647, %v553_v43 }
 0x107   :  { %558 = vlog2.f32 %v348_v44  ;;  %v352_v52 = vadd.f32 1.0, %v351_v46  ;;  %vm355_vm3 = vcmp.lt.f32.partialorder %v354_v54, 0.0004427343  ;;  %v404_v46 = vrot.slane %v403_v41, 1 }
 0x108   :  { %560 = vlog2.f32 %v357_v45  ;;  %v361_v55 = vadd.f32 1.0, %v360_v47  ;;  %vm364_vm4 = vcmp.lt.f32.partialorder %v363_v56, 0.0004427343 }
 0x109   :  { %v353_v2 = vmul.f32 %v551_v42, %v352_v52 }
 0x10a   :  { %v362_v5 = vmul.f32 %v553_v43, %v361_v55  ;;  %v410_v43 = vmax.f32 %v408_v23, %v409_v13 }
 0x10c   :  { %v555_v48 = vpop.eup %554 }
 0x10d   :  { %v557_v49 = vpop.eup %556  ;;  %v378_v50 = vadd.f32 1.0, %v555_v48  ;;  %v381_v61 = vmul.f32 -0.5, %v555_v48  ;;  %v384_v18 = vand.u32 2147483647, %v555_v48 }
 0x10e   :  { %v387_v51 = vadd.f32 1.0, %v557_v49  ;;  %v390_v3 = vmul.f32 -0.5, %v557_v49  ;;  %v393_v22 = vand.u32 2147483647, %v557_v49 }
 0x10f   :  { %562 = vlog2.f32 %v378_v50  ;;  %v382_v15 = vadd.f32 1.0, %v381_v61  ;;  %vm385_vm6 = vcmp.lt.f32.partialorder %v384_v18, 0.0004427343 }
 0x110   :  { %564 = vlog2.f32 %v387_v51  ;;  %v391_v19 = vadd.f32 1.0, %v390_v3  ;;  %vm394_vm7 = vcmp.lt.f32.partialorder %v393_v22, 0.0004427343  ;;  %v405_v51 = vmax.f32 %v403_v41, %v404_v46 }
 0x111   :  { %v559_v57 = vpop.eup %558  ;;  %v383_v12 = vmul.f32 %v555_v48, %v382_v15 }
 0x112   :  { %v561_v60 = vpop.eup %560  ;;  %v350_v1 = vmul.f32 0.6931472, %v559_v57  ;;  %v392_v34 = vmul.f32 %v557_v49, %v391_v19  ;;  %v411_v49 = vrot.slane %v410_v43, 1  ;;  %v432_v57 = vsub.f32 1.0, %v751_v9 }
 0x113   :  { %v359_v4 = vmul.f32 0.6931472, %v561_v60  ;;  %v433_v60 = vmul.f32 %v431_v53, %v405_v51 }
 0x114   :  { %v356_v8 = vsel %vm355_vm3, %v353_v2, %v350_v1  ;;  %v412_v56 = vmax.f32 %v410_v43, %v411_v49 }
 0x115   :  { %v366_v10 = vadd.f32 %v356_v8, %v338_v58  ;;  %v365_v14 = vsel %vm364_vm4, %v362_v5, %v359_v4 }
 0x116   :  { %v367_v17 = vadd.f32 %v365_v14, %v339_v6  ;;  %v434_v1 = vmul.f32 %v432_v57, %v412_v56 }
 0x117   :  { %v429_v20 = vsub.f32 %v366_v10, %v427_v11 }
 0x118   :  { %v430_v26 = vsub.f32 %v367_v17, %v428_v21 }
 0x119   :  { %v563_v24 = vpop.eup %562  ;;  %v439_v25 = vsel %vm438_vm5, %v429_v20, 0.0 }
 0x11a   :  { %v565_v27 = vpop.eup %564  ;;  %v380_v30 = vmul.f32 0.6931472, %v563_v24  ;;  %440 = vadd.xlane.f32.xlu0 %v439_v25  ;;  %v442_v39 = vsel %vm438_vm5, %v430_v26, 0.0 }
 0x11b   :  { %v389_v33 = vmul.f32 0.6931472, %v565_v27 }
 0x11c   :  { %v386_v35 = vsel %vm385_vm6, %v383_v12, %v380_v30 }
 0x11d   :  { %v396_v37 = vadd.f32 %v386_v35, %v368_v32  ;;  %v395_v38 = vsel %vm394_vm7, %v392_v34, %v389_v33 }
 0x11e   :  { %v397_v40 = vadd.f32 %v395_v38, %v369_v36  ;;  %443 = vadd.xlane.f32.xlu0 %v442_v39 }
 0x11f   :  { %v413_v42 = vsel %vm398_vm2, %v396_v37, 0.0 }
 0x120   :  { %v420_v28 = vsel %vm398_vm2, %v397_v40, 0.0  ;;  %v414_v44 = vrot.slane %v413_v42, 4 }
 0x121   :  { %v421_v45 = vrot.slane %v420_v28, 4 }
 0x122   :  { %v415_v47 = vadd.f32 %v414_v44, %v413_v42 }
 0x123   :  { %v422_v48 = vadd.f32 %v421_v45, %v420_v28 }
 0x124   :  { %v416_v29 = vrot.slane %v415_v47, 2 }
 0x125   :  { %v423_v50 = vrot.slane %v422_v48, 2 }
 0x126   :  { %v417_v52 = vadd.f32 %v416_v29, %v415_v47 }
 0x127   :  { %v424_v54 = vadd.f32 %v423_v50, %v422_v48 }
 0x128   :  { %v418_v55 = vrot.slane %v417_v52, 1 }
 0x129   :  { %v425_v58 = vrot.slane %v424_v54, 1 }
 0x12a   :  { %v419_v59 = vadd.f32 %v418_v55, %v417_v52 }
 0x12b   :  { %v426_v61 = vadd.f32 %v425_v58, %v424_v54 }
 0x12c   :  { %v435_v62 = vsub.f32 %v419_v59, %v433_v60 }
 0x12d   :  { %v436_v2 = vsub.f32 %v426_v61, %v434_v1 }
 0x12e   :  { %v453_v63 = vsel %vm438_vm5, %v435_v62, 0.0 }
 0x12f   :  { %454 = vadd.xlane.f32.xlu1 %v453_v63  ;;  %v456_v3 = vsel %vm438_vm5, %v436_v2, 0.0 }
 0x133   :  { %457 = vadd.xlane.f32.xlu1 %v456_v3 }
 0x1a7   :  { %v441_v4 = vpop.xlane.xlu0 %440 }
 0x1a8   :  { %v446_v6 = vsel %vm445_vm9, %v441_v4, 0.0 }
 0x1ab   :  { %v444_v5 = vpop.xlane.xlu0 %443 }
 0x1ac   :  { %v447_v0 = vsel %vm445_vm9, %v444_v5, 0.0 }
 0x1ad   :  { %v448_v8 = vadd.f32 %v447_v0, %v446_v6 }
 0x1af   :  { %v449_v9 = vadd.f32 %v448_v8, %v437_v7 }
 0x1b1   :  { %451 = vst.msk [vmem:[#allocation7] sm:$0x1] %vm142_vm8, %v449_v9 }
 0x1b2   :  { %599 = shalt.err (!%p596_p12)
}
 0x1b3   :  { %s600_s26 = scalar_lea.hbm %s806_s5, 16 }
 0x1b4   :  { %p601_p13 = scmp.ne.s32.totalorder %s806_s5, %s600_s26  ;;  %p604_p0 = scmp.lt.u32.totalorder %s600_s26, %s806_s5 }
 0x1b6   :  { %p606_p1 = pnand %p604_p0, %p601_p13 }
 0x1b8   :  { %609 = shalt.err (!%p606_p1)
}
 0x1b9   :  { %473 = dma.vmem_to_hbm [thread:$0]  %s471_s21, 16, %s806_s5, [#allocation6]   ;;  %v452_v15 = vld [vmem:[#allocation8] sm:$0x1] }
 0x1ba   :  { %s644_s9 = smov [#allocation8]  }
 0x1bb   :  { %s480_s10 = sshll.u32 %s644_s9, 4  ;;  %s481_s10 = int_to_ptr.vmem [resolvable:$true] %s480_s10 }
 0x1bc   :  { %v455_v10 = vpop.xlane.xlu1 %454  ;;  %s610_s1 = scalar_lea.vmem %s481_s10, 16  ;;  %s614_s11 = scalar_lea.vmem %s481_s10, 32 }
 0x1bd   :  { %v459_v14 = vsel %vm445_vm9, %v455_v10, 0.0  ;;  %p611_p2 = scmp.ne.s32.totalorder %s481_s10, %s610_s1  ;;  %p615_p3 = scmp.lt.s32.totalorder %s481_s10, %s481_s10 }
 0x1be   :  { %p616_p4 = scmp.lt.s32.totalorder %s614_s11, %s610_s1 }
 0x1c0   :  { %v458_v11 = vpop.xlane.xlu1 %457  ;;  %p617_p5 = por %p616_p4, %p615_p3 }
 0x1c1   :  { %v460_v16 = vsel %vm445_vm9, %v458_v11, 0.0 }
 0x1c2   :  { %v461_v17 = vadd.f32 %v460_v16, %v459_v14  ;;  %p618_p6 = pnand %p617_p5, %p611_p2 }
 0x1c4   :  { %v462_v18 = vadd.f32 %v461_v17, %v452_v15 }
 0x1c6   :  { %463 = vst.msk [vmem:[#allocation8] sm:$0x1] %vm142_vm8, %v462_v18 }
 0x1c7   :  { %621 = shalt.err (!%p618_p6)
}
 0x1c8   :  { %s622_s13 = scalar_lea.hbm %s807_s6, 16 }
 0x1c9   :  { %p623_p7 = scmp.ne.s32.totalorder %s807_s6, %s622_s13  ;;  %p626_p8 = scmp.lt.u32.totalorder %s622_s13, %s807_s6 }
 0x1cb   :  { %p628_p9 = pnand %p626_p8, %p623_p7 }
 0x1cd   :  { %631 = shalt.err (!%p628_p9)
}
 0x1ce   :  { %483 = dma.vmem_to_hbm [thread:$0]  %s481_s10, 16, %s807_s6, [#allocation9]  }
 0x1cf   :  { %634 = dma.done.wait [#allocation6], 16  }
 0x1d0   :  { %635 = vsyncadd [#allocation6], 4294967280 }
 0x1d1   :  { %636 = dma.done.wait [#allocation9], 16  }
 0x1d2   :  { %637 = vsyncadd [#allocation9], 4294967280 }
 0x1d3   :  { %490 = vsyncpa [#allocation5], 1 }
 0x1d4   :  { %491 = vsyncpa [#allocation6], 1 }
 0x1d5   :  { %492 = vsyncpa [#allocation9], 1 }

</bundles_post_ra>
